<compile_context>
chip_gen: v7x
topology: tpu7x:2x2x1
jax: 0.10.0
libtpu: 0.0.40
codegen_flags: <defaults>
</compile_context>

<pallas_src>
import numpy as np
import jax
import jax.numpy as jnp
from jax.experimental import pallas as pl
from jax.experimental.pallas import tpu as pltpu


def _lr_kernel(idx_ref, off_ref, w_ref, bias_ref, out_ref):
    # idx_ref : (TB, F)    int32   VMEM — per-field local category ids (batch tile)
    # off_ref : (1, F)     int32   VMEM — per-field offsets (resident across grid)
    # w_ref   : (1, V_pad) float32 VMEM — embedding table row (resident across grid)
    # bias_ref: (1, 1)     float32 SMEM
    # out_ref : (1, TB)    float32 VMEM — lane-dense output tile
    idx = idx_ref[...] + off_ref[...]                    # offsets folded in-kernel
    tb, num_fields = idx.shape
    vpad = w_ref.shape[1]

    # Hoisted lane iota (single (TB, V_pad) int32; JAX does not CSE broadcasts).
    lane = jax.lax.broadcasted_iota(jnp.int32, (tb, vpad), 1)

    # Per-field one-hot accumulation -> per-row category-count vector (TB, V_pad).
    # Static trip count (F is small), unrolled at trace time; peak live tensor is
    # a single (TB, V_pad) tile instead of (TB, F, V_pad). Accumulate in int32 and
    # cast to f32 once (saves F-1 full-tile cast passes on the VPU).
    counts_i = jnp.zeros((tb, vpad), jnp.int32)
    for f in range(num_fields):
        counts_i = counts_i + (idx[:, f:f + 1] == lane).astype(jnp.int32)
    counts = counts_i.astype(jnp.float32)

    # Gather-sum as an MXU NT matmul: (1, V_pad) · (TB, V_pad)^T -> (1, TB).
    # Weight row consumed lane-dense (no transpose / lane-sparse column), and the
    # result is produced directly in the lane-dense output layout. HIGHEST
    # precision keeps the f32 weights exact (counts are exact small integers).
    s = jax.lax.dot_general(
        w_ref[...], counts,
        dimension_numbers=(((1,), (1,)), ((), ())),
        preferred_element_type=jnp.float32,
        precision=jax.lax.Precision.HIGHEST,
    )                                                    # (1, TB)

    out_ref[...] = jax.nn.sigmoid(s + bias_ref[0, 0])


def logistic_regression_forward(x_ids, weight, bias, field_dims):
    """
    x_ids  : (batch, num_fields) int32 — per-field local category ids
    weight : (sum(field_dims),) float32 — Embedding(sum(field_dims), 1) weight
    bias   : () float32
    returns: (batch,) float32 — sigmoid(linear(x))
    """
    batch, num_fields = x_ids.shape
    vocab = int(np.sum(field_dims))

    # --- host-side layout prep -------------------------------------------------
    # Per-field offsets (same as FeaturesLinear.offsets), shipped into the kernel.
    offsets_np = np.concatenate([[0], np.cumsum(field_dims)[:-1]]).astype(np.int32)
    offsets_2d = jnp.asarray(offsets_np).reshape(1, num_fields)

    # Pad vocab to a multiple of 128 so the weight row is lane-aligned.
    vocab_pad = max(128, int(np.ceil(vocab / 128)) * 128)
    w_padded = jnp.zeros((1, vocab_pad), jnp.float32).at[0, :vocab].set(
        weight.astype(jnp.float32)
    )
    bias_arr = jnp.asarray(bias, jnp.float32).reshape(1, 1)

    # --- batch tile selection (v7x-safe VMEM budget) ---------------------------
    # Dominant per-tile buffers are the (TB, V_pad) counts tiles (i32 + f32); keep
    # the f32 one <= 8 MiB so the kernel fits comfortably inside v7x's 64 MiB VMEM
    # (and trivially on v5e/v6e's 128 MiB).
    counts_budget_bytes = 8 * 1024 * 1024
    tb_from_budget = counts_budget_bytes // (vocab_pad * 4)
    tb_cap = int(max(128, min(1024, (tb_from_budget // 128) * 128)))

    padded8 = ((batch + 7) // 8) * 8
    if padded8 <= tb_cap:
        tb = padded8                       # single tile; block == full (padded) dim
        padded_batch = padded8
    else:
        tb = tb_cap                        # multiple of 128 -> valid lane-dense block
        padded_batch = ((batch + tb - 1) // tb) * tb
    grid_size = padded_batch // tb

    # Pad the batch (tail rows use id 0; their outputs are sliced off below).
    x_in = x_ids.astype(jnp.int32)
    if padded_batch != batch:
        pad_rows = jnp.zeros((padded_batch - batch, num_fields), jnp.int32)
        x_in = jnp.concatenate([x_in, pad_rows], axis=0)

    # --- pallas call ------------------------------------------------------------
    out = pl.pallas_call(
        _lr_kernel,
        out_shape=jax.ShapeDtypeStruct((1, padded_batch), jnp.float32),
        grid=(grid_size,),
        in_specs=[
            pl.BlockSpec((tb, num_fields), lambda i: (i, 0)),   # idx batch tile
            pl.BlockSpec((1, num_fields), lambda i: (0, 0)),    # offsets (resident)
            pl.BlockSpec((1, vocab_pad), lambda i: (0, 0)),     # weight row (resident)
            pl.BlockSpec(memory_space=pltpu.MemorySpace.SMEM),  # bias scalar
        ],
        out_specs=pl.BlockSpec((1, tb), lambda i: (0, i)),      # lane-dense output
        compiler_params=pltpu.CompilerParams(
            dimension_semantics=("parallel",),
            vmem_limit_bytes=32 * 1024 * 1024,
        ),
    )(x_in, offsets_2d, w_padded, bias_arr)

    return out[0, :batch]                                        # -> (batch,)


def reference_forward(x_ids, weight, bias, field_dims):
    """Pure-JAX reference matching the PyTorch module."""
    offsets = jnp.asarray(
        np.concatenate([[0], np.cumsum(field_dims)[:-1]]).astype(np.int32)
    )
    idx = x_ids.astype(jnp.int32) + offsets[None, :]
    emb = weight[idx]                                            # (B, F)
    return jax.nn.sigmoid(jnp.sum(emb, axis=1) + bias)


if __name__ == "__main__":
    # small, deterministic setup
    field_dims = (4, 6, 5, 3)          # sum = 18 categories total
    num_fields = len(field_dims)
    vocab = int(np.sum(field_dims))

    key = jax.random.PRNGKey(0)
    k_w, k_x = jax.random.split(key)

    # torch.nn.Embedding default init ~ N(0, 1); bias initialized to zeros
    weight = jax.random.normal(k_w, (vocab,), jnp.float32)
    bias = jnp.float32(0.0)

    # check a tile-aligned batch and a ragged (padded) batch
    for batch in (8, 6):
        cols = []
        for f, fd in enumerate(field_dims):
            kf = jax.random.fold_in(jax.random.fold_in(k_x, batch), f)
            cols.append(jax.random.randint(kf, (batch, 1), 0, fd, jnp.int32))
        x_ids = jnp.concatenate(cols, axis=1)                    # (B, F) int32

        out = logistic_regression_forward(x_ids, weight, bias, field_dims)
        out = jax.block_until_ready(out)

        ref = reference_forward(x_ids, weight, bias, field_dims)
        assert out.shape == (batch,)
        np.testing.assert_allclose(np.asarray(out), np.asarray(ref),
                                   rtol=1e-5, atol=1e-5)

    print("KERNEL_OK")
</pallas_src>

<mosaic_0001>
module attributes {stable_mosaic.version = 11 : i64} {
  func.func @_lr_kernel(%arg0: i32, %arg1: memref<8x4xi32, #tpu.memory_space<vmem>>, %arg2: memref<1x4xi32, #tpu.memory_space<vmem>>, %arg3: memref<1x128xf32, #tpu.memory_space<vmem>>, %arg4: memref<1x1xf32, #tpu.memory_space<smem>>, %arg5: memref<1x8xf32, #tpu.memory_space<vmem>>) attributes {dimension_semantics = [#tpu.dimension_semantics<parallel>], iteration_bounds = array<i64: 1>, scalar_prefetch = 0 : i64, scratch_operands = 0 : i64, tpu.core_type = #tpu.core_type<tc>, window_params = [{transform_indices = @transform_0, window_bounds = array<i64: 8, 4>}, {pipeline_mode = #tpu.pipeline_mode<synchronous>, transform_indices = @transform_1, window_bounds = array<i64: 1, 4>}, {pipeline_mode = #tpu.pipeline_mode<synchronous>, transform_indices = @transform_2, window_bounds = array<i64: 1, 128>}, {transform_indices = @transform_3, window_bounds = array<i64: 1, 1>}, {transform_indices = @transform_4, window_bounds = array<i64: 1, 8>}]} {
    %c0 = arith.constant 0 : index
    %c0_0 = arith.constant 0 : index
    %0 = vector.load %arg1[%c0, %c0_0] : memref<8x4xi32, #tpu.memory_space<vmem>>, vector<8x4xi32>
    %c0_1 = arith.constant 0 : index
    %c0_2 = arith.constant 0 : index
    %1 = vector.load %arg2[%c0_1, %c0_2] : memref<1x4xi32, #tpu.memory_space<vmem>>, vector<1x4xi32>
    %2 = vector.broadcast %1 : vector<1x4xi32> to vector<8x4xi32>
    %3 = arith.addi %0, %2 : vector<8x4xi32>
    %4 = tpu.iota {dimensions = array<i32: 1>} : vector<8x128xi32>
    %c0_i32 = arith.constant 0 : i32
    %5 = vector.broadcast %c0_i32 : i32 to vector<8x128xi32>
    %6 = vector.extract_strided_slice %3 {offsets = [0, 0], sizes = [8, 1], strides = [1, 1]} : vector<8x4xi32> to vector<8x1xi32>
    %7 = vector.broadcast %6 : vector<8x1xi32> to vector<8x128xi32>
    %8 = arith.cmpi eq, %7, %4 : vector<8x128xi32>
    %9 = arith.extui %8 : vector<8x128xi1> to vector<8x128xi32>
    %10 = arith.addi %5, %9 : vector<8x128xi32>
    %11 = vector.extract_strided_slice %3 {offsets = [0, 1], sizes = [8, 1], strides = [1, 1]} : vector<8x4xi32> to vector<8x1xi32>
    %12 = vector.broadcast %11 : vector<8x1xi32> to vector<8x128xi32>
    %13 = arith.cmpi eq, %12, %4 : vector<8x128xi32>
    %14 = arith.extui %13 : vector<8x128xi1> to vector<8x128xi32>
    %15 = arith.addi %10, %14 : vector<8x128xi32>
    %16 = vector.extract_strided_slice %3 {offsets = [0, 2], sizes = [8, 1], strides = [1, 1]} : vector<8x4xi32> to vector<8x1xi32>
    %17 = vector.broadcast %16 : vector<8x1xi32> to vector<8x128xi32>
    %18 = arith.cmpi eq, %17, %4 : vector<8x128xi32>
    %19 = arith.extui %18 : vector<8x128xi1> to vector<8x128xi32>
    %20 = arith.addi %15, %19 : vector<8x128xi32>
    %21 = vector.extract_strided_slice %3 {offsets = [0, 3], sizes = [8, 1], strides = [1, 1]} : vector<8x4xi32> to vector<8x1xi32>
    %22 = vector.broadcast %21 : vector<8x1xi32> to vector<8x128xi32>
    %23 = arith.cmpi eq, %22, %4 : vector<8x128xi32>
    %24 = arith.extui %23 : vector<8x128xi1> to vector<8x128xi32>
    %25 = arith.addi %20, %24 : vector<8x128xi32>
    %26 = arith.sitofp %25 : vector<8x128xi32> to vector<8x128xf32>
    %c0_3 = arith.constant 0 : index
    %c0_4 = arith.constant 0 : index
    %27 = vector.load %arg3[%c0_3, %c0_4] : memref<1x128xf32, #tpu.memory_space<vmem>>, vector<1x128xf32>
    %cst = arith.constant dense<0.000000e+00> : vector<1x8xf32>
    %28 = tpu.matmul %27, %26, %cst {dimension_numbers = #tpu.dot_dimension_numbers<[1], [1], [0], [0], [0, 0, 1, 0], [], []>, precision = #tpu.contract_precision<fp32>} : vector<1x128xf32>, vector<8x128xf32>, vector<1x8xf32> -> vector<1x8xf32>
    %c0_5 = arith.constant 0 : index
    %c0_6 = arith.constant 0 : index
    %29 = memref.load %arg4[%c0_5, %c0_6] : memref<1x1xf32, #tpu.memory_space<smem>>
    %30 = vector.broadcast %29 : f32 to vector<1x8xf32>
    %31 = arith.addf %28, %30 : vector<1x8xf32>
    %32 = arith.negf %31 : vector<1x8xf32>
    %33 = math.exp %32 : vector<1x8xf32>
    %cst_7 = arith.constant 1.000000e+00 : f32
    %34 = vector.broadcast %cst_7 : f32 to vector<1x8xf32>
    %35 = arith.addf %34, %33 : vector<1x8xf32>
    %36 = arith.divf %34, %35 : vector<1x8xf32>
    %c0_8 = arith.constant 0 : index
    %c0_9 = arith.constant 0 : index
    %37 = vector.load %arg5[%c0_8, %c0_9] : memref<1x8xf32, #tpu.memory_space<vmem>>, vector<1x8xf32>
    tpu.vector_store %arg5[%c0_8, %c0_9], %36 {strides = array<i32>} : memref<1x8xf32, #tpu.memory_space<vmem>>, vector<1x8xf32>,
    return
  }
  func.func @transform_0(%arg0: i32) -> (i32, i32) {
    %c0_i32 = arith.constant 0 : i32
    %c0_i32_0 = arith.constant 0 : i32
    return %arg0, %c0_i32 : i32, i32
  }
  func.func @transform_1(%arg0: i32) -> (i32, i32) {
    %c0_i32 = arith.constant 0 : i32
    %c0_i32_0 = arith.constant 0 : i32
    %c0_i32_1 = arith.constant 0 : i32
    return %c0_i32, %c0_i32_0 : i32, i32
  }
  func.func @transform_2(%arg0: i32) -> (i32, i32) {
    %c0_i32 = arith.constant 0 : i32
    %c0_i32_0 = arith.constant 0 : i32
    %c0_i32_1 = arith.constant 0 : i32
    return %c0_i32, %c0_i32_0 : i32, i32
  }
  func.func @transform_3(%arg0: i32) -> (i32, i32) {
    %c0_i32 = arith.constant 0 : i32
    %c0_i32_0 = arith.constant 0 : i32
    %c0_i32_1 = arith.constant 0 : i32
    return %c0_i32, %c0_i32_0 : i32, i32
  }
  func.func @transform_4(%arg0: i32) -> (i32, i32) {
    %c0_i32 = arith.constant 0 : i32
    %c0_i32_0 = arith.constant 0 : i32
    return %c0_i32, %arg0 : i32, i32
  }
}

</mosaic_0001>

<bundles_post_ra>
// kernel: tpu_custom_call.1
= control target key start
LH: loop header
LB: loop body
LE: loop exit
PB: predicated region body
PF: predicated region fallthrough
CT: control target
= control target key end

     0   :  { %v617_v2 = vmov 0   ;;  %v618_v4 = vmov 2   ;;  %s679_s0 = inlined_call_operand.vmem [shape: s32[8,4], index: 0, kind: input, shape index: {}]   ;;  %s680_s1 = inlined_call_operand.vmem [shape: s32[1,4], index: 1, kind: input, shape index: {}]   ;;  %s681_s2 = inlined_call_operand.vmem [shape: f32[1,128], index: 2, kind: input, shape index: {}]   ;;  %s682_s3 = inlined_call_operand.<no memory space> [shape: f32[1,1], index: 3, kind: input, shape index: {}]   ;;  %s683_s4 = inlined_call_operand.hbm [shape: f32[1,8], index: 4, kind: output, shape index: {}]  }
   0x1   :  { %v19_v0 = vld [vmem:[%s679_s0] sm:$0xff]  ;;  %584 = vset.pattern.permute.xlu0 %v617_v2  ;;  %586 = vset.pattern.permute.xlu1 %v618_v4 }
   0x2   :  { %v523_v1 = vld [vmem:[%s680_s1] ss:$0 sm:$0xff] }
   0x3   :  { %v25_v3 = vadd.s32 %v523_v1, %v19_v0 }
   0x4   :  { %10 = vsyncpa [#allocation4], 0  ;;  %v619_v5 = vmov 1   ;;  %v620_v6 = vmov 3   ;;  %v621_v7 = vmov 0.0   ;;  %vm622_vm0 = vmmov 0  }
   0x5   :  { %29 = vperm.xlu0 %584, %v25_v3   ;;  %40 = vperm.xlu1 %586, %v25_v3   ;;  %v26_v8 = vlaneseq  ;;  %v52_v9 = vld [vmem:[%s681_s2] sm:$0x1]  ;;  %v54_v33 = vstv %s682_s3  ;;  %s623_s20 = smov [#allocation3]   ;;  %vm507_vm5 = vcmask 57344  }
   0x6   :  { %537 = vmatprep.subr.mxu1 %v621_v7  ;;  %552 = vmatprep.subr.mxu0 %v621_v7  ;;  %v121_v13 = vand.u32 4294901760, %v52_v9  ;;  %s515_s21 = sshll.u32 %s623_s20, 4  ;;  %s516_s21 = int_to_ptr.vmem [resolvable:$true] %s515_s21 }
   0x7   :  { %539 = vmatprep.mubr.msk.f32.mxu1 %vm622_vm0, %v621_v7  ;;  %554 = vmatprep.mubr.msk.f32.mxu0 %vm622_vm0, %v621_v7  ;;  %v27_v10 = vand.u32 127, %v26_v8  ;;  %s593_s22 = scalar_lea.vmem %s516_s21, 16  ;;  %s597_s3 = scalar_lea.vmem %s516_s21, 32 }
   0x8   :  { %v122_v16 = vsub.f32 %v52_v9, %v121_v13  ;;  %p594_p0 = scmp.ne.s32.totalorder %s516_s21, %s593_s22  ;;  %p598_p1 = scmp.lt.s32.totalorder %s516_s21, %s516_s21 }
   0x9   :  { %585 = vset.pattern.permute.xlu0 %v619_v5  ;;  %587 = vset.pattern.permute.xlu1 %v620_v6  ;;  %p599_p2 = scmp.lt.s32.totalorder %s597_s3, %s593_s22 }
   0xa   :  { %34 = vperm.xlu0 %585, %v25_v3   ;;  %46 = vperm.xlu1 %587, %v25_v3   ;;  %v123_v22 = vand.u32 4294901760, %v122_v16 }
   0xb   :  { %p600_p3 = por %p599_p2, %p598_p1 }
   0xc   :  { %v124_v25 = vsub.f32 %v122_v16, %v123_v22 }
   0xd   :  { %p601_p4 = pnand %p600_p3, %p594_p0 }
   0xe   :  { %588 = vset.pattern.permute.xlu0 %v620_v6  ;;  %v125_v28 = vand.u32 4294901760, %v124_v25 }
  0x84   :  { %v30_v11 = vpop.permute.xlu0 %29  ;;  %v41_v12 = vpop.permute.xlu1 %40 }
  0x85   :  { %vm31_vm1 = vcmp.eq.s32.totalorder %v30_v11, %v27_v10  ;;  %vm42_vm2 = vcmp.eq.s32.totalorder %v41_v12, %v27_v10 }
  0x86   :  { %v32_v17 = vsel %vm31_vm1, 1, %v617_v2  ;;  %v43_v20 = vsel %vm42_vm2, 1, %v617_v2 }
  0x89   :  { %v35_v14 = vpop.permute.xlu0 %34  ;;  %v47_v15 = vpop.permute.xlu1 %46 }
  0x8a   :  { %vm36_vm3 = vcmp.eq.s32.totalorder %v35_v14, %v27_v10  ;;  %vm48_vm4 = vcmp.eq.s32.totalorder %v47_v15, %v27_v10 }
  0x8b   :  { %v37_v18 = vsel %vm36_vm3, 1, %v617_v2  ;;  %v49_v21 = vsel %vm48_vm4, 1, %v617_v2 }
  0x8c   :  { %v38_v19 = vadd.s32 %v37_v18, %v32_v17 }
  0x8e   :  { %v44_v23 = vadd.s32 %v43_v20, %v38_v19 }
  0x90   :  { %v50_v24 = vadd.s32 %v49_v21, %v44_v23 }
  0x92   :  { %v51_v26 = vcvt.s32.f32 %v50_v24 }
  0x94   :  { %v56_v27 = vand.u32 4294901760, %v51_v26 }
  0x96   :  { %v133_v29 = vsub.f32 %v51_v26, %v56_v27  ;;  %538 = vmatpush3.xpose.msra.mxu1 %v56_v27  ;;  %553 = vmatpush3.xpose.msra.mxu0 %v56_v27 }
  0x97   :  { %557 = vmatprep.subr.mxu0 %v621_v7  ;;  %542 = vmatprep.subr.mxu1 %v621_v7 }
  0x98   :  { %v134_v30 = vand.u32 4294901760, %v133_v29 }
  0x99   :  { %540 = vmatmul.mubr.f32.vlgmr.msra.gmra.mrb[0].mxu1 %v125_v28  ;;  %555 = vmatmul.mubr.f32.vlgmr.msra.gmra.mrb[0].mxu0 %v123_v22 }
  0x9a   :  { %558 = vmatpush3.xpose.msra.mxu0 %v134_v30  ;;  %v135_v31 = vsub.f32 %v133_v29, %v134_v30  ;;  %544 = vmatprep.mubr.msk.f32.mxu1 %vm622_vm0, %v621_v7 }
  0x9b   :  { %559 = vmatprep.mubr.msk.f32.mxu0 %vm622_vm0, %v621_v7  ;;  %562 = vmatprep.subr.mxu0 %v621_v7 }
  0x9c   :  { %v136_v32 = vand.u32 4294901760, %v135_v31 }
  0x9e   :  { %543 = vmatpush3.xpose.msra.mxu1 %v136_v32 }
  0x9f   :  { %547 = vmatprep.subr.mxu1 %v621_v7 }
  0xa1   :  { %545 = vmatmul.mubr.f32.vlgmr.msra.gmra.mrb[0].mxu1 %v121_v13  ;;  %560 = vmatmul.mubr.f32.vlgmr.msra.gmra.mrb[0].mxu0 %v121_v13 }
  0xa2   :  { %563 = vmatpush3.xpose.msra.mxu0 %v56_v27  ;;  %548 = vmatpush3.xpose.msra.mxu1 %v133_v29 }
  0xa3   :  { %549 = vmatprep.mubr.msk.f32.mxu1 %vm622_vm0, %v621_v7  ;;  %564 = vmatprep.mubr.msk.f32.mxu0 %vm622_vm0, %v621_v7 }
  0xa9   :  { %550 = vmatmul.mubr.f32.vlgmr.msra.gmra.mrb[0].mxu1 %v122_v16  ;;  %565 = vmatmul.mubr.f32.vlgmr.msra.gmra.mrb[0].mxu0 %v121_v13 }
 0x17c   :  { %v277_v34 = vpop.f32.mrb[0].mxu1  ;;  %v497_v35 = vpop.f32.mrb[0].mxu0 }
 0x17d   :  { %v567_v36 = vadd.f32 %v277_v34, %v54_v33  ;;  %v551_v37 = vpop.f32.mrb[1].mxu1  ;;  %v566_v38 = vpop.f32.mrb[1].mxu0 }
 0x17f   :  { %v568_v39 = vadd.f32 %v567_v36, %v497_v35 }
 0x181   :  { %v524_v40 = vmul.f32 -1.442695, %v568_v39 }
 0x183   :  { %589 = vpow2.f32 %v524_v40 }
 0x18d   :  { %v590_v41 = vpop.eup %589 }
 0x18e   :  { %v504_v42 = vadd.f32 1.0, %v590_v41 }
 0x190   :  { %591 = vrcp.f32 %v504_v42 }
 0x19a   :  { %v592_v43 = vpop.eup %591 }
 0x19b   :  { %508 = vst.msk [vmem:[#allocation3] sm:$0x1] %vm507_vm5, %v592_v43 }
 0x19c   :  { %604 = shalt.err (!%p601_p4)
}
 0x19d   :  { %s605_s25 = scalar_lea.hbm %s683_s4, 16 }
 0x19e   :  { %p606_p5 = scmp.ne.s32.totalorder %s683_s4, %s605_s25  ;;  %p609_p6 = scmp.lt.u32.totalorder %s605_s25, %s683_s4 }
 0x1a0   :  { %p611_p7 = pnand %p609_p6, %p606_p5 }
 0x1a2   :  { %614 = shalt.err (!%p611_p7)
}
 0x1a3   :  { %518 = dma.vmem_to_hbm [thread:$0]  %s516_s21, 16, %s683_s4, [#allocation4]  }
 0x1a4   :  { %615 = dma.done.wait [#allocation4], 16  }
 0x1a5   :  { %616 = vsyncadd [#allocation4], 4294967280 }
 0x1a6   :  { %522 = vsyncpa [#allocation4], 1 }

</bundles_post_ra>
